<compile_context>
chip_gen: v6e
topology: v6e:2x2x1
jax: 0.10.0
libtpu: 0.0.40
codegen_flags: <defaults>
</compile_context>

<pallas_src>
import math
from functools import partial, lru_cache

import numpy as np
import jax
import jax.numpy as jnp
from jax.experimental import pallas as pl
from jax.experimental.pallas import tpu as pltpu

# ----------------------------- configuration ---------------------------------
IN_CHANNELS = 6
ENC_CHANNELS = (32, 64, 128, 256, 512)
ENC_NUM_HEAD = (2, 4, 8, 16, 32)
ENC_DEPTHS = (1, 1, 1, 1, 1)
DEC_CHANNELS = (64, 64, 128, 256)
DEC_NUM_HEAD = (4, 4, 8, 16)
DEC_DEPTHS = (1, 1, 1, 1)
STRIDE = (2, 2, 2, 2)
NUM_STAGES = 5
PATCH_SIZE_MAX = 128           # enable_flash=False
ORDERS = ("z", "z-trans", "hilbert", "hilbert-trans")
MLP_RATIO = 4
MAX_ROW_BLK = 512              # large row tiles (review: ~85% HBM roofline vs 29% @128)


def _round_up(n, m):
    return ((n + m - 1) // m) * m


def _row_pad(n):
    """Padded row count for a stage-resident feature tensor."""
    if n > MAX_ROW_BLK:
        return _round_up(n, MAX_ROW_BLK)
    return max(8, _round_up(n, 8))


def pad_rows(x, npad):
    n = x.shape[0]
    if n == npad:
        return x
    return jnp.concatenate([x, jnp.zeros((npad - n, x.shape[1]), x.dtype)], axis=0)


# ------------------------------ in-kernel math --------------------------------
def _gelu_tanh(x):
    return 0.5 * x * (1.0 + jnp.tanh(0.7978845608028654 * (x + 0.044715 * x * x * x)))


def _ln(x, g, b, eps=1e-5):
    mu = jnp.mean(x, axis=-1, keepdims=True)
    xc = x - mu
    var = jnp.mean(xc * xc, axis=-1, keepdims=True)
    return xc * jax.lax.rsqrt(var + eps) * g + b


def _mm(x, w):
    # bf16 operands on the MXU, f32 accumulation.
    return jnp.dot(x.astype(jnp.bfloat16), w, preferred_element_type=jnp.float32)


# ------------------------------ Pallas kernels --------------------------------
def _linear_kernel(x_ref, *rest, act, residual):
    if residual:
        res_ref, w_ref, b_ref, o_ref = rest
    else:
        w_ref, b_ref, o_ref = rest
    y = _mm(x_ref[...], w_ref[...]) + b_ref[...]
    if act == "gelu":
        y = _gelu_tanh(y)
    if residual:
        y = y + res_ref[...].astype(jnp.float32)
    o_ref[...] = y.astype(o_ref.dtype)


_LINEAR = partial(_linear_kernel, act=None, residual=False)
_LINEAR_RES = partial(_linear_kernel, act=None, residual=True)
_LINEAR_GELU = partial(_linear_kernel, act="gelu", residual=False)
_LINEAR_GELU_RES = partial(_linear_kernel, act="gelu", residual=True)


def _gelu_kernel(x_ref, o_ref):
    o_ref[...] = _gelu_tanh(x_ref[...].astype(jnp.float32)).astype(o_ref.dtype)


def _cpe_kernel(x_ref, w1_ref, b1_ref, w2_ref, b2_ref, g_ref, bn_ref, o_ref):
    # fused CPE (center-tap conv -> Linear -> LayerNorm) + residual
    x = x_ref[...].astype(jnp.float32)
    h = _mm(x, w1_ref[...]) + b1_ref[...]
    h = _mm(h, w2_ref[...]) + b2_ref[...]
    h = _ln(h, g_ref[...], bn_ref[...])
    o_ref[...] = (x + h).astype(o_ref.dtype)


def _ln_qkv_kernel(x_ref, g_ref, bn_ref, w_ref, b_ref, o_ref):
    # fused pre-norm + QKV projection
    x = x_ref[...].astype(jnp.float32)
    h = _ln(x, g_ref[...], bn_ref[...])
    o_ref[...] = (_mm(h, w_ref[...]) + b_ref[...]).astype(o_ref.dtype)


def _mlp_kernel(x_ref, g_ref, bn_ref, w1_ref, b1_ref, w2_ref, b2_ref, o_ref):
    # fused pre-norm MLP (LN -> fc1 -> GELU -> fc2) + residual
    x = x_ref[...].astype(jnp.float32)
    h = _ln(x, g_ref[...], bn_ref[...])
    h = _gelu_tanh(_mm(h, w1_ref[...]) + b1_ref[...])
    h = _mm(h, w2_ref[...]) + b2_ref[...]
    o_ref[...] = (x + h).astype(o_ref.dtype)


def _attn_kernel(qkv_ref, o_ref, *, heads, dh, k, pb, scale):
    # pb serialized patches per grid step; per-head softmax attention.
    # Input layout (pb*k, 3C) with channels last (lane dense); output (pb*k, C).
    c = heads * dh
    for p in range(pb):
        r0 = p * k
        outs = []
        for h in range(heads):
            q = qkv_ref[r0:r0 + k, h * dh:(h + 1) * dh].astype(jnp.bfloat16)
            kt = qkv_ref[r0:r0 + k, c + h * dh:c + (h + 1) * dh].astype(jnp.bfloat16)
            v = qkv_ref[r0:r0 + k, 2 * c + h * dh:2 * c + (h + 1) * dh].astype(jnp.bfloat16)
            s = jax.lax.dot_general(q, kt, (((1,), (1,)), ((), ())),
                                    preferred_element_type=jnp.float32) * scale
            s = s - jnp.max(s, axis=-1, keepdims=True)
            e = jnp.exp(s)
            denom = jnp.sum(e, axis=-1, keepdims=True)
            pattn = e * pl.reciprocal(denom, approx=True)
            outs.append(jnp.dot(pattn.astype(jnp.bfloat16), v,
                                preferred_element_type=jnp.float32))
        o_ref[r0:r0 + k, :] = jnp.concatenate(outs, axis=-1).astype(o_ref.dtype)


# --------------------------- pallas_call builders ------------------------------
@lru_cache(maxsize=None)
def _build_rowwise(kernel_fn, shapes, n_row, out_cols, row_blk, npad):
    in_specs = []
    for idx, (shp, _) in enumerate(shapes):
        if idx <= n_row:      # x plus row-tiled extras
            in_specs.append(pl.BlockSpec((row_blk, shp[1]), lambda i: (i, 0)))
        else:                 # broadcast constants (weights / biases / LN params)
            in_specs.append(pl.BlockSpec(shp, lambda i: (0, 0)))
    return pl.pallas_call(
        kernel_fn,
        out_shape=jax.ShapeDtypeStruct((npad, out_cols), jnp.float32),
        grid=(npad // row_blk,),
        in_specs=in_specs,
        out_specs=pl.BlockSpec((row_blk, out_cols), lambda i: (i, 0)),
        compiler_params=pltpu.CompilerParams(dimension_semantics=("parallel",)),
    )


def call_rowwise(kernel_fn, x_pad, consts, out_cols, row_inputs=()):
    npad = x_pad.shape[0]
    row_blk = MAX_ROW_BLK if npad > MAX_ROW_BLK else npad
    args = (x_pad, *row_inputs, *consts)
    shapes = tuple((tuple(a.shape), str(a.dtype)) for a in args)
    call = _build_rowwise(kernel_fn, shapes, len(row_inputs), out_cols, row_blk, npad)
    return call(*args)


@lru_cache(maxsize=None)
def _build_attention(heads, dh, k, pb, npatch, c3):
    c = heads * dh
    kern = partial(_attn_kernel, heads=heads, dh=dh, k=k, pb=pb,
                   scale=float(dh) ** -0.5)
    return pl.pallas_call(
        kern,
        out_shape=jax.ShapeDtypeStruct((npatch * k, c), jnp.float32),
        grid=(npatch // pb,),
        in_specs=[pl.BlockSpec((pb * k, c3), lambda i: (i, 0))],
        out_specs=pl.BlockSpec((pb * k, c), lambda i: (i, 0)),
        compiler_params=pltpu.CompilerParams(dimension_semantics=("parallel",)),
    )


def _patch_batch(npatch):
    for pb in range(min(8, npatch), 0, -1):
        if npatch % pb == 0:
            return pb
    return 1


# ----------------------- host-side serialization glue -------------------------
def _z_order_encode(x, y, z, depth=8):
    code = np.zeros_like(x, dtype=np.int64)
    for i in range(depth):
        code |= ((x >> i) & 1) << (3 * i + 2)
        code |= ((y >> i) & 1) << (3 * i + 1)
        code |= ((z >> i) & 1) << (3 * i + 0)
    return code


def serialize(grid_coord, depth=8):
    gx = grid_coord[:, 0].astype(np.int64)
    gy = grid_coord[:, 1].astype(np.int64)
    gz = grid_coord[:, 2].astype(np.int64)
    codes = []
    for o in ORDERS:
        if o in ("z", "hilbert"):          # TODO(synk): hilbert ~ z-order stand-in
            codes.append(_z_order_encode(gx, gy, gz, depth))
        else:
            codes.append(_z_order_encode(gz, gy, gx, depth))
    codes = np.stack(codes, 0)
    order = np.argsort(codes, axis=1, kind="stable")
    inverse = np.argsort(order, axis=1, kind="stable")
    return {"code": codes, "order": order, "inverse": inverse, "n": grid_coord.shape[0]}


def build_pooling_meta(meta, stride):
    pooling_depth = (math.ceil(stride) - 1).bit_length()          # stride 2 -> 1
    code = meta["code"] >> (pooling_depth * 3)
    _, cluster, counts = np.unique(code[0], return_inverse=True, return_counts=True)
    indices = np.argsort(cluster, kind="stable")
    idx_ptr = np.concatenate([[0], np.cumsum(counts)])
    head = indices[idx_ptr[:-1]]
    new_code = code[:, head]
    new_order = np.argsort(new_code, axis=1, kind="stable")
    new_inverse = np.argsort(new_order, axis=1, kind="stable")
    new_meta = {"code": new_code, "order": new_order, "inverse": new_inverse,
                "n": head.shape[0]}
    return new_meta, cluster.astype(np.int32), int(head.shape[0])


def build_pad(n, patch_size):
    # Single-batch version of SerializedAttention.get_padding_and_inverse.
    if n <= patch_size:
        return np.arange(n, dtype=np.int32)
    npad = _round_up(n, patch_size)
    pad = np.arange(npad, dtype=np.int32)
    rem = n % patch_size
    if rem != 0:
        pad[npad - patch_size + rem:] = pad[npad - 2 * patch_size + rem: npad - patch_size]
    return pad


# ------------------------------ parameters ------------------------------------
class ParamFactory:
    def __init__(self, seed=0):
        self.key = jax.random.PRNGKey(seed)
        self.count = 0

    def _next(self):
        self.count += 1
        return jax.random.fold_in(self.key, self.count)

    def linear(self, cin, cout):
        bound = 1.0 / math.sqrt(cin)
        k1, k2 = jax.random.split(self._next())
        # weights stored bf16 (MXU-native, halves weight DMA bytes); biases f32
        w = jax.random.uniform(k1, (cin, cout), jnp.float32, -bound, bound).astype(jnp.bfloat16)
        b = jax.random.uniform(k2, (1, cout), jnp.float32, -bound, bound)
        return {"w": w, "b": b}

    def layernorm(self, c):
        return {"g": jnp.ones((1, c), jnp.float32), "b": jnp.zeros((1, c), jnp.float32)}


def make_block_params(pf, c, num_heads):
    return {
        "num_heads": num_heads,
        # CPE: SubMConv3d (center tap -> linear, see TODO) + Linear + LayerNorm
        "cpe_conv": pf.linear(c, c),
        "cpe_lin": pf.linear(c, c),
        "cpe_ln": pf.layernorm(c),
        "norm1": pf.layernorm(c),
        "qkv": pf.linear(c, 3 * c),
        "proj": pf.linear(c, c),
        "norm2": pf.layernorm(c),
        "mlp_fc1": pf.linear(c, MLP_RATIO * c),
        "mlp_fc2": pf.linear(MLP_RATIO * c, c),
    }


def build_params(pf):
    params = {"embedding": pf.linear(IN_CHANNELS, ENC_CHANNELS[0])}
    enc = []
    for s in range(NUM_STAGES):
        stage = {}
        if s > 0:
            stage["down"] = {"proj": pf.linear(ENC_CHANNELS[s - 1], ENC_CHANNELS[s])}
        stage["blocks"] = [make_block_params(pf, ENC_CHANNELS[s], ENC_NUM_HEAD[s])
                           for _ in range(ENC_DEPTHS[s])]
        enc.append(stage)
    params["enc"] = enc

    dec_full = list(DEC_CHANNELS) + [ENC_CHANNELS[-1]]
    dec = []
    for s in reversed(range(NUM_STAGES - 1)):
        stage = {
            "up": {"proj": pf.linear(dec_full[s + 1], dec_full[s]),
                   "proj_skip": pf.linear(ENC_CHANNELS[s], dec_full[s])},
            "blocks": [make_block_params(pf, dec_full[s], DEC_NUM_HEAD[s])
                       for _ in range(DEC_DEPTHS[s])],
        }
        dec.append(stage)
    params["dec"] = dec
    return params


# ------------------------------ model forward ---------------------------------
def attention_forward(bp, x_pad, n, meta, order_index):
    c = bp["proj"]["w"].shape[1]
    heads = bp["num_heads"]
    dh = c // heads
    patch_size = min(n, PATCH_SIZE_MAX)            # non-flash SerializedAttention path
    order = meta["order"][order_index]
    inverse = meta["inverse"][order_index]
    pad = build_pad(n, patch_size)
    idx = order[pad].astype(np.int32)              # pad ∘ serialized order
    npatch = idx.shape[0] // patch_size
    pb = _patch_batch(npatch)

    # fused pre-norm + QKV projection (keeps padded rows; row-wise op)
    qkv = call_rowwise(_ln_qkv_kernel, x_pad,
                       [bp["norm1"]["g"], bp["norm1"]["b"],
                        bp["qkv"]["w"], bp["qkv"]["b"]], 3 * c)
    qkv_g = jnp.take(qkv, jnp.asarray(idx), axis=0)                      # (npatch*K, 3C)

    attn = _build_attention(heads, dh, patch_size, pb, npatch, 3 * c)(qkv_g)

    inv_idx = np.zeros(x_pad.shape[0], np.int32)
    inv_idx[:n] = inverse.astype(np.int32)
    out = jnp.take(attn, jnp.asarray(inv_idx), axis=0)                   # back to point order
    # fused output projection + residual add
    return call_rowwise(_LINEAR_RES, out, [bp["proj"]["w"], bp["proj"]["b"]], c,
                        row_inputs=(x_pad,))


def block_forward(bp, x_pad, n, meta, order_index):
    c = bp["proj"]["w"].shape[1]
    # fused CPE (conv->lin->LN) + residual
    x_pad = call_rowwise(_cpe_kernel, x_pad,
                         [bp["cpe_conv"]["w"], bp["cpe_conv"]["b"],
                          bp["cpe_lin"]["w"], bp["cpe_lin"]["b"],
                          bp["cpe_ln"]["g"], bp["cpe_ln"]["b"]], c)
    # pre-norm serialized attention + residual (drop_path == identity at inference)
    x_pad = attention_forward(bp, x_pad, n, meta, order_index)
    # fused pre-norm MLP + residual
    x_pad = call_rowwise(_mlp_kernel, x_pad,
                         [bp["norm2"]["g"], bp["norm2"]["b"],
                          bp["mlp_fc1"]["w"], bp["mlp_fc1"]["b"],
                          bp["mlp_fc2"]["w"], bp["mlp_fc2"]["b"]], c)
    return x_pad


def pooling_forward(pp, x_pad, n, cluster, m):
    cout = pp["proj"]["w"].shape[1]
    h = call_rowwise(_LINEAR, x_pad, [pp["proj"]["w"], pp["proj"]["b"]], cout)
    pooled = jax.ops.segment_max(h[:n], jnp.asarray(cluster, jnp.int32),
                                 num_segments=m)
    pooled = pad_rows(pooled, _row_pad(m))
    # norm = Identity (turn_off_bn), act = GELU
    return call_rowwise(_gelu_kernel, pooled, [], cout)


def unpooling_forward(up, x_pooled_pad, skip_pad, n_skip, cluster):
    cout = up["proj"]["w"].shape[1]
    a = call_rowwise(_LINEAR_GELU, x_pooled_pad,
                     [up["proj"]["w"], up["proj"]["b"]], cout)
    idx = np.zeros(skip_pad.shape[0], np.int32)
    idx[:n_skip] = cluster
    a_g = jnp.take(a, jnp.asarray(idx), axis=0)
    # gelu(linear(skip)) + gathered pooled features, fused in one kernel
    return call_rowwise(_LINEAR_GELU_RES, skip_pad,
                        [up["proj_skip"]["w"], up["proj_skip"]["b"]], cout,
                        row_inputs=(a_g,))


def ptv3_forward(params, feat, grid_coord):
    n = feat.shape[0]
    metas = [serialize(grid_coord)]
    # pad once for the stage; all row-wise kernels keep the padded layout
    x = pad_rows(jnp.asarray(feat, jnp.float32), _row_pad(n))
    # Embedding ('MLP'): Linear -> Identity(BN off) -> GELU, fused
    x = call_rowwise(_LINEAR_GELU, x,
                     [params["embedding"]["w"], params["embedding"]["b"]],
                     ENC_CHANNELS[0])

    skips = []
    for s in range(NUM_STAGES):
        stage = params["enc"][s]
        if s > 0:
            new_meta, cluster, m = build_pooling_meta(metas[-1], STRIDE[s - 1])
            skips.append((x, n, metas[-1], cluster))      # pooling_parent / pooling_inverse
            x = pooling_forward(stage["down"], x, n, cluster, m)
            metas.append(new_meta)
            n = m
        cur_meta = metas[-1]
        for i, bp in enumerate(stage["blocks"]):
            x = block_forward(bp, x, n, cur_meta, i % len(ORDERS))

    for stage in params["dec"]:
        skip_x, skip_n, skip_meta, cluster = skips.pop()
        x = unpooling_forward(stage["up"], x, skip_x, skip_n, cluster)
        n = skip_n
        for i, bp in enumerate(stage["blocks"]):
            x = block_forward(bp, x, n, skip_meta, i % len(ORDERS))
    return x[:n]


# ----------------------------------- main --------------------------------------
if __name__ == "__main__":
    key = jax.random.PRNGKey(0)
    kc, kf = jax.random.split(key)
    N = 256
    grid_coord = np.asarray(jax.random.randint(kc, (N, 3), 0, 64, dtype=jnp.int32))
    feat = jax.random.normal(kf, (N, IN_CHANNELS), dtype=jnp.float32)

    pf = ParamFactory(seed=0)
    params = build_params(pf)

    out = ptv3_forward(params, feat, grid_coord)
    out = jax.block_until_ready(out)
    assert out.shape == (N, DEC_CHANNELS[0]) and out.dtype == jnp.float32
    assert bool(jnp.all(jnp.isfinite(out)))
    print("KERNEL_OK")
</pallas_src>

<mosaic_0001>
module attributes {stable_mosaic.version = 11 : i64} {
  func.func @_linear_kernel(%arg0: i32, %arg1: memref<256x6xf32, #tpu.memory_space<vmem>>, %arg2: memref<6x32xbf16, #tpu.memory_space<vmem>>, %arg3: memref<1x32xf32, #tpu.memory_space<vmem>>, %arg4: memref<256x32xf32, #tpu.memory_space<vmem>>) attributes {dimension_semantics = [#tpu.dimension_semantics<parallel>], iteration_bounds = array<i64: 1>, scalar_prefetch = 0 : i64, scratch_operands = 0 : i64, tpu.core_type = #tpu.core_type<tc>, window_params = [{transform_indices = @transform_0, window_bounds = array<i64: 256, 6>}, {pipeline_mode = #tpu.pipeline_mode<synchronous>, transform_indices = @transform_1, window_bounds = array<i64: 6, 32>}, {pipeline_mode = #tpu.pipeline_mode<synchronous>, transform_indices = @transform_2, window_bounds = array<i64: 1, 32>}, {transform_indices = @transform_3, window_bounds = array<i64: 256, 32>}]} {
    %c0 = arith.constant 0 : index
    %c0_0 = arith.constant 0 : index
    %0 = vector.load %arg1[%c0, %c0_0] : memref<256x6xf32, #tpu.memory_space<vmem>>, vector<256x6xf32>
    %c0_1 = arith.constant 0 : index
    %c0_2 = arith.constant 0 : index
    %1 = vector.load %arg2[%c0_1, %c0_2] : memref<6x32xbf16, #tpu.memory_space<vmem>>, vector<6x32xbf16>
    %2 = arith.truncf %0 : vector<256x6xf32> to vector<256x6xbf16>
    %cst = arith.constant dense<0.000000e+00> : vector<256x32xf32>
    %3 = tpu.matmul %2, %1, %cst {dimension_numbers = #tpu.dot_dimension_numbers<[1], [0], [0], [1], [0, 0, 1, 1], [], []>} : vector<256x6xbf16>, vector<6x32xbf16>, vector<256x32xf32> -> vector<256x32xf32>
    %c0_3 = arith.constant 0 : index
    %c0_4 = arith.constant 0 : index
    %4 = vector.load %arg3[%c0_3, %c0_4] : memref<1x32xf32, #tpu.memory_space<vmem>>, vector<1x32xf32>
    %5 = vector.broadcast %4 : vector<1x32xf32> to vector<256x32xf32>
    %6 = arith.addf %3, %5 : vector<256x32xf32>
    %cst_5 = arith.constant 5.000000e-01 : f32
    %7 = vector.broadcast %cst_5 : f32 to vector<256x32xf32>
    %8 = arith.mulf %7, %6 : vector<256x32xf32>
    %cst_6 = arith.constant 4.471500e-02 : f32
    %9 = vector.broadcast %cst_6 : f32 to vector<256x32xf32>
    %10 = arith.mulf %9, %6 : vector<256x32xf32>
    %11 = arith.mulf %10, %6 : vector<256x32xf32>
    %12 = arith.mulf %11, %6 : vector<256x32xf32>
    %13 = arith.addf %6, %12 : vector<256x32xf32>
    %cst_7 = arith.constant 0.797884583 : f32
    %14 = vector.broadcast %cst_7 : f32 to vector<256x32xf32>
    %15 = arith.mulf %14, %13 : vector<256x32xf32>
    %16 = math.tanh %15 : vector<256x32xf32>
    %cst_8 = arith.constant 1.000000e+00 : f32
    %17 = vector.broadcast %cst_8 : f32 to vector<256x32xf32>
    %18 = arith.addf %17, %16 : vector<256x32xf32>
    %19 = arith.mulf %8, %18 : vector<256x32xf32>
    %c0_9 = arith.constant 0 : index
    %c0_10 = arith.constant 0 : index
    %20 = vector.load %arg4[%c0_9, %c0_10] : memref<256x32xf32, #tpu.memory_space<vmem>>, vector<256x32xf32>
    tpu.vector_store %arg4[%c0_9, %c0_10], %19 {strides = array<i32>} : memref<256x32xf32, #tpu.memory_space<vmem>>, vector<256x32xf32>,
    return
  }
  func.func @transform_0(%arg0: i32) -> (i32, i32) {
    %c0_i32 = arith.constant 0 : i32
    %c0_i32_0 = arith.constant 0 : i32
    return %arg0, %c0_i32 : i32, i32
  }
  func.func @transform_1(%arg0: i32) -> (i32, i32) {
    %c0_i32 = arith.constant 0 : i32
    %c0_i32_0 = arith.constant 0 : i32
    %c0_i32_1 = arith.constant 0 : i32
    return %c0_i32, %c0_i32_0 : i32, i32
  }
  func.func @transform_2(%arg0: i32) -> (i32, i32) {
    %c0_i32 = arith.constant 0 : i32
    %c0_i32_0 = arith.constant 0 : i32
    %c0_i32_1 = arith.constant 0 : i32
    return %c0_i32, %c0_i32_0 : i32, i32
  }
  func.func @transform_3(%arg0: i32) -> (i32, i32) {
    %c0_i32 = arith.constant 0 : i32
    %c0_i32_0 = arith.constant 0 : i32
    return %arg0, %c0_i32 : i32, i32
  }
}

</mosaic_0001>

<bundles_post_ra>
// kernel: tpu_custom_call.1
= control target key start
LH: loop header
LB: loop body
LE: loop exit
PB: predicated region body
PF: predicated region fallthrough
CT: control target
= control target key end

     0   :  { %vm120_vm0 = vcmask 1042432   ;;  %vm71_vm1 = vcmask 48128   ;;  %vm573_vm2 = vcmask 261120   ;;  %s1255_s1 = inlined_call_operand.vmem [shape: bf16[6,32], index: 1, kind: input, shape index: {}]   ;;  %s1256_s0 = inlined_call_operand.vmem [shape: f32[256,6], index: 0, kind: input, shape index: {}]   ;;  %s1257_s2 = inlined_call_operand.vmem [shape: f32[1,32], index: 2, kind: input, shape index: {}]   ;;  %s1258_s3 = inlined_call_operand.vmem [shape: f32[256,32], index: 3, kind: output, shape index: {}]  }
   0x1   :  { %v47_v0 = vld [vmem:[%s1255_s1] sm:$0x7]  ;;  %v16_v2 = vld [vmem:[%s1256_s0 + $0x8] sm:$0xff]  ;;  %v17_v7 = vld [vmem:[%s1256_s0 + $0x10] sm:$0xff] }
   0x2   :  { %v15_v1 = vld [vmem:[%s1256_s0] sm:$0xff]  ;;  %680 = vmatprep.subr.msk.bf16.mxu0 %vm120_vm0, %v47_v0  ;;  %681 = vmatprep.subr.msk.bf16.mxu1 %vm120_vm0, %v47_v0  ;;  %v122_v3 = vsel %vm120_vm0, %v47_v0, 0  ;;  %v32_v6 = vld [vmem:[%s1256_s0 + $0x88] sm:$0xff]  ;;  %v18_v9 = vld [vmem:[%s1256_s0 + $0x18] sm:$0xff] }
   0x3   :  { %v48_v4 = vpack.c.bf16 %v16_v2, %v15_v1  ;;  %v31_v5 = vld [vmem:[%s1256_s0 + $0x80] sm:$0xff]  ;;  %645 = vmatpush3.bf16.msra.mxu0 %v122_v3  ;;  %679 = vmatpush3.bf16.msra.mxu1 %v122_v3  ;;  %v33_v10 = vld [vmem:[%s1256_s0 + $0x90] sm:$0xff]  ;;  %v34_v11 = vld [vmem:[%s1256_s0 + $0x98] sm:$0xff]  ;;  %v49_v12 = vpack.c.bf16 %v18_v9, %v17_v7 }
   0x4   :  { %v56_v8 = vpack.c.bf16 %v32_v6, %v31_v5  ;;  %v57_v13 = vpack.c.bf16 %v34_v11, %v33_v10  ;;  %v19_v14 = vld [vmem:[%s1256_s0 + $0x20] sm:$0xff]  ;;  %v20_v15 = vld [vmem:[%s1256_s0 + $0x28] sm:$0xff]  ;;  %v21_v20 = vld [vmem:[%s1256_s0 + $0x30] sm:$0xff] }
   0x5   :  { %646 = vmatprep.mubr.msk.bf16.mxu0 %vm71_vm1, %v48_v4  ;;  %v35_v16 = vld [vmem:[%s1256_s0 + $0xa0] sm:$0xff]  ;;  %v50_v17 = vpack.c.bf16 %v20_v15, %v19_v14  ;;  %v36_v18 = vld [vmem:[%s1256_s0 + $0xa8] sm:$0xff]  ;;  %v22_v21 = vld [vmem:[%s1256_s0 + $0x38] sm:$0xff] }
   0x6   :  { %662 = vmatprep.mubr.msk.bf16.mxu1 %vm71_vm1, %v56_v8  ;;  %647 = vmatmul.mubr.msk.bf16.vlgmr.msra.gmra.mxu0 %vm71_vm1, %v49_v12  ;;  %v58_v19 = vpack.c.bf16 %v36_v18, %v35_v16  ;;  %v37_v22 = vld [vmem:[%s1256_s0 + $0xb0] sm:$0xff]  ;;  %v38_v23 = vld [vmem:[%s1256_s0 + $0xb8] sm:$0xff]  ;;  %v23_v24 = vld [vmem:[%s1256_s0 + $0x40] sm:$0xff]  ;;  %v51_v28 = vpack.c.bf16 %v22_v21, %v21_v20 }
   0x7   :  { %663 = vmatmul.mubr.msk.bf16.vlgmr.msra.gmra.mxu1 %vm71_vm1, %v57_v13  ;;  %650 = vmatprep.mubr.msk.bf16.mxu0 %vm71_vm1, %v50_v17  ;;  %v24_v25 = vld [vmem:[%s1256_s0 + $0x48] sm:$0xff]  ;;  %v39_v26 = vld [vmem:[%s1256_s0 + $0xc0] sm:$0xff]  ;;  %v59_v29 = vpack.c.bf16 %v38_v23, %v37_v22  ;;  %v25_v32 = vld [vmem:[%s1256_s0 + $0x50] sm:$0xff] }
   0x8   :  { %666 = vmatprep.mubr.msk.bf16.mxu1 %vm71_vm1, %v58_v19  ;;  %v40_v27 = vld [vmem:[%s1256_s0 + $0xc8] sm:$0xff]  ;;  %v52_v30 = vpack.c.bf16 %v24_v25, %v23_v24  ;;  %v26_v33 = vld [vmem:[%s1256_s0 + $0x58] sm:$0xff]  ;;  %v41_v34 = vld [vmem:[%s1256_s0 + $0xd0] sm:$0xff] }
   0x9   :  { %v60_v31 = vpack.c.bf16 %v40_v27, %v39_v26  ;;  %v42_v35 = vld [vmem:[%s1256_s0 + $0xd8] sm:$0xff]  ;;  %v27_v36 = vld [vmem:[%s1256_s0 + $0x60] sm:$0xff]  ;;  %v28_v37 = vld [vmem:[%s1256_s0 + $0x68] sm:$0xff]  ;;  %v53_v40 = vpack.c.bf16 %v26_v33, %v25_v32 }
   0xa   :  { %v43_v38 = vld [vmem:[%s1256_s0 + $0xe0] sm:$0xff]  ;;  %v44_v39 = vld [vmem:[%s1256_s0 + $0xe8] sm:$0xff]  ;;  %v61_v41 = vpack.c.bf16 %v42_v35, %v41_v34  ;;  %v54_v42 = vpack.c.bf16 %v28_v37, %v27_v36  ;;  %v29_v44 = vld [vmem:[%s1256_s0 + $0x70] sm:$0xff] }
   0xb   :  { %v62_v43 = vpack.c.bf16 %v44_v39, %v43_v38  ;;  %v30_v45 = vld [vmem:[%s1256_s0 + $0x78] sm:$0xff]  ;;  %v45_v46 = vld [vmem:[%s1256_s0 + $0xf0] sm:$0xff]  ;;  %v884_v50 = vld [vmem:[%s1257_s2] ss:$0 sm:$0xff] }
   0xc   :  { %v46_v47 = vld [vmem:[%s1256_s0 + $0xf8] sm:$0xff]  ;;  %v55_v48 = vpack.c.bf16 %v30_v45, %v29_v44 }
   0xd   :  { %v63_v49 = vpack.c.bf16 %v46_v47, %v45_v46 }
   0xe   :  { %651 = vmatmul.mubr.msk.bf16.gmra.mxu0 %vm71_vm1, %v51_v28 }
   0xf   :  { %667 = vmatmul.mubr.msk.bf16.gmra.mxu1 %vm71_vm1, %v59_v29  ;;  %654 = vmatprep.mubr.msk.bf16.mxu0 %vm71_vm1, %v52_v30 }
  0x10   :  { %670 = vmatprep.mubr.msk.bf16.mxu1 %vm71_vm1, %v60_v31 }
  0x16   :  { %655 = vmatmul.mubr.msk.bf16.gmra.mxu0 %vm71_vm1, %v53_v40 }
  0x17   :  { %671 = vmatmul.mubr.msk.bf16.gmra.mxu1 %vm71_vm1, %v61_v41  ;;  %658 = vmatprep.mubr.msk.bf16.mxu0 %vm71_vm1, %v54_v42 }
  0x18   :  { %674 = vmatprep.mubr.msk.bf16.mxu1 %vm71_vm1, %v62_v43 }
  0x1e   :  { %659 = vmatmul.mubr.msk.bf16.gmra.mxu0 %vm71_vm1, %v55_v48 }
  0x1f   :  { %675 = vmatmul.mubr.msk.bf16.gmra.mxu1 %vm71_vm1, %v63_v49 }
  0xc6   :  { %v648_v51 = vpop.f32.mrf.mxu0 }
  0xc7   :  { %v664_v52 = vpop.f32.mrf.mxu1  ;;  %v167_v53 = vadd.f32 %v648_v51, %v884_v50 }
  0xc8   :  { %v231_v54 = vadd.f32 %v664_v52, %v884_v50  ;;  %v158_v55 = vpop.f32.mrf.mxu0 }
  0xc9   :  { %v222_v56 = vpop.f32.mrf.mxu1  ;;  %v319_v57 = vmul.f32 0.044715, %v167_v53  ;;  %v159_v59 = vadd.f32 %v884_v50, %v158_v55  ;;  %v287_v44 = vmul.f32 0.5, %v167_v53 }
  0xca   :  { %v335_v58 = vmul.f32 0.044715, %v231_v54  ;;  %v890_v60 = vadd.f32 %v884_v50, %v222_v56  ;;  %v649_v61 = vpop.f32.mrf.mxu0  ;;  %v303_v47 = vmul.f32 0.5, %v231_v54 }
  0xcb   :  { %v665_v62 = vpop.f32.mrf.mxu1  ;;  %v351_v63 = vmul.f32 %v319_v57, %v167_v53  ;;  %v893_v1 = vadd.f32 %v649_v61, %v884_v50  ;;  %v317_v3 = vmul.f32 0.044715, %v159_v59  ;;  %v933_v55 = vmul.f32 0.5, %v159_v59 }
  0xcc   :  { %v367_v0 = vmul.f32 %v335_v58, %v231_v54  ;;  %v896_v2 = vadd.f32 %v665_v62, %v884_v50  ;;  %v333_v4 = vmul.f32 0.044715, %v890_v60  ;;  %v161_v5 = vpop.f32.mrf.mxu0 }
  0xcd   :  { %v225_v6 = vpop.f32.mrf.mxu1  ;;  %v383_v7 = vmul.f32 %v351_v63, %v167_v53  ;;  %v320_v9 = vmul.f32 0.044715, %v893_v1  ;;  %v349_v10 = vmul.f32 %v317_v3, %v159_v59  ;;  %v904_v16 = vadd.f32 %v884_v50, %v161_v5 }
  0xce   :  { %v399_v8 = vmul.f32 %v367_v0, %v231_v54  ;;  %v365_v11 = vmul.f32 %v333_v4, %v890_v60  ;;  %v336_v12 = vmul.f32 0.044715, %v896_v2  ;;  %v652_v17 = vpop.f32.mrf.mxu0  ;;  %v909_v21 = vadd.f32 %v884_v50, %v225_v6 }
  0xcf   :  { %v415_v13 = vadd.f32 %v383_v7, %v167_v53  ;;  %v352_v15 = vmul.f32 %v320_v9, %v893_v1  ;;  %v381_v18 = vmul.f32 %v349_v10, %v159_v59  ;;  %v668_v22 = vpop.f32.mrf.mxu1  ;;  %v318_v29 = vmul.f32 0.044715, %v904_v16 }
  0xd0   :  { %v431_v14 = vadd.f32 %v399_v8, %v231_v54  ;;  %v397_v19 = vmul.f32 %v365_v11, %v890_v60  ;;  %v368_v20 = vmul.f32 %v336_v12, %v896_v2  ;;  %v334_v31 = vmul.f32 0.044715, %v909_v21  ;;  %v174_v32 = vpop.f32.mrf.mxu0 }
  0xd1   :  { %v447_v23 = vmul.f32 0.7978846, %v415_v13  ;;  %v384_v25 = vmul.f32 %v352_v15, %v893_v1  ;;  %v413_v26 = vadd.f32 %v381_v18, %v159_v59  ;;  %v238_v36 = vpop.f32.mrf.mxu1  ;;  %v350_v38 = vmul.f32 %v318_v29, %v904_v16 }
  0xd2   :  { %v463_v24 = vmul.f32 0.7978846, %v431_v14  ;;  %v429_v27 = vadd.f32 %v397_v19, %v890_v60  ;;  %v400_v28 = vmul.f32 %v368_v20, %v896_v2  ;;  %v366_v39 = vmul.f32 %v334_v31, %v909_v21  ;;  %v653_v51 = vpop.f32.mrf.mxu0 }
  0xd3   :  { %682 = vtanh.f32 %v447_v23  ;;  %v416_v30 = vadd.f32 %v384_v25, %v893_v1  ;;  %v445_v33 = vmul.f32 0.7978846, %v413_v26  ;;  %v921_v40 = vadd.f32 %v652_v17, %v884_v50  ;;  %v669_v52 = vpop.f32.mrf.mxu1 }
  0xd4   :  { %684 = vtanh.f32 %v463_v24  ;;  %v461_v34 = vmul.f32 0.7978846, %v429_v27  ;;  %v432_v35 = vadd.f32 %v400_v28, %v896_v2  ;;  %v924_v42 = vadd.f32 %v668_v22, %v884_v50  ;;  %v177_v15 = vpop.f32.mrf.mxu0 }
  0xd5   :  { %v448_v37 = vmul.f32 0.7978846, %v416_v30  ;;  %686 = vtanh.f32 %v445_v33  ;;  %v927_v43 = vadd.f32 %v884_v50, %v174_v32  ;;  %v382_v45 = vmul.f32 %v350_v38, %v904_v16  ;;  %v241_v23 = vpop.f32.mrf.mxu1 }
  0xd6   :  { %v464_v41 = vmul.f32 0.7978846, %v432_v35  ;;  %688 = vtanh.f32 %v461_v34  ;;  %v398_v46 = vmul.f32 %v366_v39, %v909_v21  ;;  %v323_v48 = vmul.f32 0.044715, %v921_v40  ;;  %v656_v34 = vpop.f32.mrf.mxu0 }
  0xd7   :  { %690 = vtanh.f32 %v448_v37  ;;  %v339_v49 = vmul.f32 0.044715, %v924_v42  ;;  %v414_v56 = vadd.f32 %v382_v45, %v904_v16  ;;  %v321_v54 = vmul.f32 0.044715, %v927_v43  ;;  %v672_v39 = vpop.f32.mrf.mxu1 }
  0xd8   :  { %692 = vtanh.f32 %v464_v41  ;;  %v430_v53 = vadd.f32 %v398_v46, %v909_v21  ;;  %v355_v57 = vmul.f32 %v323_v48, %v921_v40  ;;  %v941_v61 = vadd.f32 %v884_v50, %v238_v36 }
  0xd9   :  { %v371_v58 = vmul.f32 %v339_v49, %v924_v42  ;;  %v446_v62 = vmul.f32 0.7978846, %v414_v56  ;;  %v944_v59 = vadd.f32 %v653_v51, %v884_v50  ;;  %v947_v0 = vadd.f32 %v669_v52, %v884_v50 }
  0xda   :  { %v462_v63 = vmul.f32 0.7978846, %v430_v53  ;;  %v301_v3 = vmul.f32 0.5, %v890_v60  ;;  %v387_v4 = vmul.f32 %v355_v57, %v921_v40  ;;  %v353_v6 = vmul.f32 %v321_v54, %v927_v43  ;;  %v190_v54 = vpop.f32.mrf.mxu0 }
  0xdb   :  { %v403_v5 = vmul.f32 %v371_v58, %v924_v42  ;;  %v288_v7 = vmul.f32 0.5, %v893_v1  ;;  %694 = vtanh.f32 %v446_v62  ;;  %v337_v8 = vmul.f32 0.044715, %v941_v61 }
  0xdc   :  { %v324_v9 = vmul.f32 0.044715, %v944_v59  ;;  %696 = vtanh.f32 %v462_v63  ;;  %v419_v10 = vadd.f32 %v387_v4, %v921_v40  ;;  %v385_v60 = vmul.f32 %v353_v6, %v927_v43  ;;  %v254_v4 = vpop.f32.mrf.mxu1 }
  0xdd   :  { %v435_v11 = vadd.f32 %v403_v5, %v924_v42  ;;  %v304_v12 = vmul.f32 0.5, %v896_v2  ;;  %v369_v13 = vmul.f32 %v337_v8, %v941_v61  ;;  %v340_v1 = vmul.f32 0.044715, %v947_v0 }
  0xde   :  { %v356_v14 = vmul.f32 %v324_v9, %v944_v59  ;;  %v964_v18 = vmul.f32 0.5, %v904_v16  ;;  %v451_v19 = vmul.f32 0.7978846, %v419_v10  ;;  %v417_v22 = vadd.f32 %v385_v60, %v927_v43 }
  0xdf   :  { %v467_v20 = vmul.f32 0.7978846, %v435_v11  ;;  %v401_v2 = vmul.f32 %v369_v13, %v941_v61  ;;  %v372_v27 = vmul.f32 %v340_v1, %v947_v0  ;;  %v971_v30 = vadd.f32 %v884_v50, %v177_v15 }
  0xe0   :  { %v683_v17 = vpop.eup %682  ;;  %v388_v26 = vmul.f32 %v356_v14, %v944_v59  ;;  %698 = vtanh.f32 %v451_v19  ;;  %v449_v29 = vmul.f32 0.7978846, %v417_v22  ;;  %v981_v48 = vadd.f32 %v884_v50, %v241_v23 }
  0xe1   :  { %v685_v24 = vpop.eup %684  ;;  %v511_v25 = vadd.f32 1.0, %v683_v17  ;;  %700 = vtanh.f32 %v467_v20  ;;  %v433_v32 = vadd.f32 %v401_v2, %v941_v61  ;;  %v404_v38 = vmul.f32 %v372_v27, %v947_v0 }
  0xe2   :  { %v527_v28 = vadd.f32 1.0, %v685_v24  ;;  %v687_v16 = vpop.eup %686  ;;  %v420_v33 = vadd.f32 %v388_v26, %v944_v59  ;;  %702 = vtanh.f32 %v449_v29  ;;  %v322_v56 = vmul.f32 0.044715, %v971_v30  ;;  %v657_v29 = vpop.f32.mrf.mxu0 }
  0xe3   :  { %v543_v31 = vmul.f32 %v511_v25, %v287_v44  ;;  %v689_v35 = vpop.eup %688  ;;  %v509_v37 = vadd.f32 1.0, %v687_v16  ;;  %v465_v45 = vmul.f32 0.7978846, %v433_v32  ;;  %v436_v52 = vadd.f32 %v404_v38, %v947_v0  ;;  %v673_v16 = vpop.f32.mrf.mxu1 }
  0xe4   :  { %v559_v36 = vmul.f32 %v527_v28, %v303_v47  ;;  %v691_v41 = vpop.eup %690  ;;  %v525_v44 = vadd.f32 1.0, %v689_v35  ;;  %v452_v46 = vmul.f32 0.7978846, %v420_v33  ;;  %v302_v58 = vmul.f32 0.5, %v909_v21 }
  0xe5   :  { %576 = vst.msk [vmem:[%s1258_s3 + $0x10] sm:$0xff] %vm573_vm2, %v543_v31  ;;  %v693_v49 = vpop.eup %692  ;;  %v541_v47 = vmul.f32 %v509_v37, %v933_v55  ;;  %v512_v51 = vadd.f32 1.0, %v691_v41  ;;  %704 = vtanh.f32 %v465_v45  ;;  %v468_v63 = vmul.f32 0.7978846, %v436_v52  ;;  %v257_v52 = vpop.f32.mrf.mxu1 }
  0xe6   :  { %592 = vst.msk [vmem:[%s1258_s3 + $0x90] sm:$0xff] %vm573_vm2, %v559_v36  ;;  %v557_v53 = vmul.f32 %v525_v44, %v301_v3  ;;  %v528_v57 = vadd.f32 1.0, %v693_v49  ;;  %706 = vtanh.f32 %v452_v46  ;;  %v354_v55 = vmul.f32 %v322_v56, %v971_v30 }
  0xe7   :  { %574 = vst.msk [vmem:[%s1258_s3] sm:$0xff] %vm573_vm2, %v541_v47  ;;  %v544_v62 = vmul.f32 %v512_v51, %v288_v7  ;;  %v338_v21 = vmul.f32 0.044715, %v981_v48  ;;  %v1002_v5 = vadd.f32 %v656_v34, %v884_v50  ;;  %v1005_v6 = vadd.f32 %v672_v39, %v884_v50  ;;  %v193_v51 = vpop.f32.mrf.mxu0 }
  0xe8   :  { %590 = vst.msk [vmem:[%s1258_s3 + $0x80] sm:$0xff] %vm573_vm2, %v557_v53  ;;  %v560_v3 = vmul.f32 %v528_v57, %v304_v12  ;;  %v695_v7 = vpop.eup %694  ;;  %v291_v8 = vmul.f32 0.5, %v921_v40  ;;  %708 = vtanh.f32 %v468_v63  ;;  %v386_v9 = vmul.f32 %v354_v55, %v971_v30 }
  0xe9   :  { %577 = vst.msk [vmem:[%s1258_s3 + $0x18] sm:$0xff] %vm573_vm2, %v544_v62  ;;  %v1014_v10 = vadd.f32 %v884_v50, %v190_v54  ;;  %v697_v11 = vpop.eup %696  ;;  %v510_v60 = vadd.f32 1.0, %v695_v7  ;;  %v370_v12 = vmul.f32 %v338_v21, %v981_v48  ;;  %v327_v13 = vmul.f32 0.044715, %v1002_v5 }
  0xea   :  { %593 = vst.msk [vmem:[%s1258_s3 + $0x98] sm:$0xff] %vm573_vm2, %v560_v3  ;;  %v1023_v14 = vadd.f32 %v884_v50, %v254_v4  ;;  %v526_v40 = vadd.f32 1.0, %v697_v11  ;;  %v307_v1 = vmul.f32 0.5, %v924_v42  ;;  %v418_v15 = vadd.f32 %v386_v9, %v971_v30 }
  0xeb   :  { %v343_v17 = vmul.f32 0.044715, %v1005_v6  ;;  %v542_v19 = vmul.f32 %v510_v60, %v964_v18  ;;  %v289_v20 = vmul.f32 0.5, %v927_v43  ;;  %v402_v22 = vmul.f32 %v370_v12, %v981_v48 }
  0xec   :  { %v359_v23 = vmul.f32 %v327_v13, %v1002_v5  ;;  %v558_v24 = vmul.f32 %v526_v40, %v302_v58  ;;  %v450_v25 = vmul.f32 0.7978846, %v418_v15  ;;  %v325_v26 = vmul.f32 0.044715, %v1014_v10  ;;  %v660_v13 = vpop.f32.mrf.mxu0  ;;  %v676_v40 = vpop.f32.mrf.mxu1 }
  0xed   :  { %v375_v2 = vmul.f32 %v343_v17, %v1005_v6  ;;  %v699_v27 = vpop.eup %698  ;;  %575 = vst.msk [vmem:[%s1258_s3 + $0x8] sm:$0xff] %vm573_vm2, %v542_v19  ;;  %v305_v42 = vmul.f32 0.5, %v941_v61  ;;  %v434_v43 = vadd.f32 %v402_v22, %v981_v48  ;;  %v341_v28 = vmul.f32 0.044715, %v1023_v14 }
  0xee   :  { %v391_v18 = vmul.f32 %v359_v23, %v1002_v5  ;;  %v701_v31 = vpop.eup %700  ;;  %591 = vst.msk [vmem:[%s1258_s3 + $0x88] sm:$0xff] %vm573_vm2, %v558_v24  ;;  %v515_v32 = vadd.f32 1.0, %v699_v27  ;;  %710 = vtanh.f32 %v450_v25  ;;  %v357_v61 = vmul.f32 %v325_v26, %v1014_v10 }
  0xef   :  { %v407_v33 = vmul.f32 %v375_v2, %v1005_v6  ;;  %v703_v34 = vpop.eup %702  ;;  %v531_v35 = vadd.f32 1.0, %v701_v31  ;;  %v466_v36 = vmul.f32 0.7978846, %v434_v43  ;;  %v373_v38 = vmul.f32 %v341_v28, %v1023_v14 }
  0xf0   :  { %v423_v37 = vadd.f32 %v391_v18, %v1002_v5  ;;  %v547_v39 = vmul.f32 %v515_v32, %v291_v8  ;;  %v513_v41 = vadd.f32 1.0, %v703_v34  ;;  %v389_v45 = vmul.f32 %v357_v61, %v1014_v10 }
  0xf1   :  { %v439_v44 = vadd.f32 %v407_v33, %v1005_v6  ;;  %v563_v46 = vmul.f32 %v531_v35, %v307_v1  ;;  %712 = vtanh.f32 %v466_v36  ;;  %v405_v47 = vmul.f32 %v373_v38, %v1023_v14 }
  0xf2   :  { %v455_v49 = vmul.f32 0.7978846, %v423_v37  ;;  %v705_v56 = vpop.eup %704  ;;  %580 = vst.msk [vmem:[%s1258_s3 + $0x30] sm:$0xff] %vm573_vm2, %v547_v39  ;;  %v545_v53 = vmul.f32 %v513_v41, %v289_v20  ;;  %v421_v58 = vadd.f32 %v389_v45, %v1014_v10  ;;  %v1059_v54 = vadd.f32 %v657_v29, %v884_v50 }
  0xf3   :  { %v471_v57 = vmul.f32 0.7978846, %v439_v44  ;;  %v707_v62 = vpop.eup %706  ;;  %596 = vst.msk [vmem:[%s1258_s3 + $0xb0] sm:$0xff] %vm573_vm2, %v563_v46  ;;  %v529_v63 = vadd.f32 1.0, %v705_v56  ;;  %v437_v55 = vadd.f32 %v405_v47, %v1023_v14  ;;  %v1067_v4 = vadd.f32 %v673_v16, %v884_v50 }
  0xf4   :  { %714 = vtanh.f32 %v455_v49  ;;  %578 = vst.msk [vmem:[%s1258_s3 + $0x20] sm:$0xff] %vm573_vm2, %v545_v53  ;;  %v292_v3 = vmul.f32 0.5, %v944_v59  ;;  %v516_v21 = vadd.f32 1.0, %v707_v62  ;;  %v453_v7 = vmul.f32 0.7978846, %v421_v58 }
  0xf5   :  { %716 = vtanh.f32 %v471_v57  ;;  %v709_v8 = vpop.eup %708  ;;  %v561_v9 = vmul.f32 %v529_v63, %v305_v42  ;;  %v308_v11 = vmul.f32 0.5, %v947_v0  ;;  %v469_v60 = vmul.f32 0.7978846, %v437_v55 }
  0xf6   :  { %v328_v12 = vmul.f32 0.044715, %v1059_v54  ;;  %v548_v1 = vmul.f32 %v516_v21, %v292_v3  ;;  %v532_v15 = vadd.f32 1.0, %v709_v8  ;;  %718 = vtanh.f32 %v453_v7 }
  0xf7   :  { %v344_v17 = vmul.f32 0.044715, %v1067_v4  ;;  %594 = vst.msk [vmem:[%s1258_s3 + $0xa0] sm:$0xff] %vm573_vm2, %v561_v9  ;;  %720 = vtanh.f32 %v469_v60  ;;  %v1083_v0 = vadd.f32 %v884_v50, %v193_v51  ;;  %v1086_v19 = vadd.f32 %v884_v50, %v257_v52  ;;  %v270_v51 = vpop.f32.mrf.mxu1 }
  0xf8   :  { %v360_v59 = vmul.f32 %v328_v12, %v1059_v54  ;;  %581 = vst.msk [vmem:[%s1258_s3 + $0x38] sm:$0xff] %vm573_vm2, %v548_v1  ;;  %v564_v20 = vmul.f32 %v532_v15, %v308_v11  ;;  %v1094_v23 = vadd.f32 %v660_v13, %v884_v50  ;;  %v1097_v24 = vadd.f32 %v676_v40, %v884_v50 }
  0xf9   :  { %v376_v22 = vmul.f32 %v344_v17, %v1067_v4  ;;  %v290_v25 = vmul.f32 0.5, %v971_v30  ;;  %v306_v2 = vmul.f32 0.5, %v981_v48  ;;  %v326_v27 = vmul.f32 0.044715, %v1083_v0  ;;  %v206_v30 = vpop.f32.mrf.mxu0  ;;  %v677_v40 = vpop.f32.mrf.mxu1 }
  0xfa   :  { %v392_v26 = vmul.f32 %v360_v59, %v1059_v54  ;;  %597 = vst.msk [vmem:[%s1258_s3 + $0xb8] sm:$0xff] %vm573_vm2, %v564_v20  ;;  %v295_v42 = vmul.f32 0.5, %v1002_v5  ;;  %v342_v18 = vmul.f32 0.044715, %v1086_v19  ;;  %v331_v28 = vmul.f32 0.044715, %v1094_v23 }
  0xfb   :  { %v408_v43 = vmul.f32 %v376_v22, %v1067_v4  ;;  %v711_v29 = vpop.eup %710  ;;  %v311_v48 = vmul.f32 0.5, %v1005_v6  ;;  %v358_v31 = vmul.f32 %v326_v27, %v1083_v0  ;;  %v347_v32 = vmul.f32 0.044715, %v1097_v24  ;;  %v661_v58 = vpop.f32.mrf.mxu0 }
  0xfc   :  { %v424_v16 = vadd.f32 %v392_v26, %v1059_v54  ;;  %v514_v33 = vadd.f32 1.0, %v711_v29  ;;  %v374_v5 = vmul.f32 %v342_v18, %v1086_v19  ;;  %v363_v34 = vmul.f32 %v331_v28, %v1094_v23 }
  0xfd   :  { %v440_v61 = vadd.f32 %v408_v43, %v1067_v4  ;;  %v390_v36 = vmul.f32 %v358_v31, %v1083_v0  ;;  %v379_v37 = vmul.f32 %v347_v32, %v1097_v24  ;;  %v1121_v6 = vadd.f32 %v884_v50, %v206_v30  ;;  %v209_v20 = vpop.f32.mrf.mxu0  ;;  %v273_v30 = vpop.f32.mrf.mxu1 }
  0xfe   :  { %v456_v35 = vmul.f32 0.7978846, %v424_v16  ;;  %v713_v38 = vpop.eup %712  ;;  %v546_v39 = vmul.f32 %v514_v33, %v290_v25  ;;  %v406_v44 = vmul.f32 %v374_v5, %v1086_v19  ;;  %v395_v45 = vmul.f32 %v363_v34, %v1094_v23 }
  0xff   :  { %v472_v41 = vmul.f32 0.7978846, %v440_v61  ;;  %v530_v46 = vadd.f32 1.0, %v713_v38  ;;  %v422_v49 = vadd.f32 %v390_v36, %v1083_v0  ;;  %v411_v47 = vmul.f32 %v379_v37, %v1097_v24 }
 0x100   :  { %722 = vtanh.f32 %v456_v35  ;;  %579 = vst.msk [vmem:[%s1258_s3 + $0x28] sm:$0xff] %vm573_vm2, %v546_v39  ;;  %v293_v56 = vmul.f32 0.5, %v1014_v10  ;;  %v438_v53 = vadd.f32 %v406_v44, %v1086_v19  ;;  %v427_v57 = vadd.f32 %v395_v45, %v1094_v23 }
 0x101   :  { %v715_v52 = vpop.eup %714  ;;  %724 = vtanh.f32 %v472_v41  ;;  %v562_v63 = vmul.f32 %v530_v46, %v306_v2  ;;  %v454_v3 = vmul.f32 0.7978846, %v422_v49  ;;  %v443_v21 = vadd.f32 %v411_v47, %v1097_v24 }
 0x102   :  { %v717_v62 = vpop.eup %716  ;;  %v519_v55 = vadd.f32 1.0, %v715_v52  ;;  %v470_v8 = vmul.f32 0.7978846, %v438_v53  ;;  %v459_v9 = vmul.f32 0.7978846, %v427_v57  ;;  %v1136_v11 = vadd.f32 %v884_v50, %v270_v51 }
 0x103   :  { %v535_v7 = vadd.f32 1.0, %v717_v62  ;;  %v719_v60 = vpop.eup %718  ;;  %595 = vst.msk [vmem:[%s1258_s3 + $0xa8] sm:$0xff] %vm573_vm2, %v562_v63  ;;  %726 = vtanh.f32 %v454_v3  ;;  %v475_v12 = vmul.f32 0.7978846, %v443_v21  ;;  %v329_v13 = vmul.f32 0.044715, %v1121_v6 }
 0x104   :  { %v551_v10 = vmul.f32 %v519_v55, %v295_v42  ;;  %v721_v1 = vpop.eup %720  ;;  %v517_v17 = vadd.f32 1.0, %v719_v60  ;;  %v309_v59 = vmul.f32 0.5, %v1023_v14  ;;  %728 = vtanh.f32 %v470_v8 }
 0x105   :  { %v567_v15 = vmul.f32 %v535_v7, %v311_v48  ;;  %v533_v22 = vadd.f32 1.0, %v721_v1  ;;  %730 = vtanh.f32 %v459_v9  ;;  %v361_v25 = vmul.f32 %v329_v13, %v1121_v6 }
 0x106   :  { %584 = vst.msk [vmem:[%s1258_s3 + $0x50] sm:$0xff] %vm573_vm2, %v551_v10  ;;  %v345_v2 = vmul.f32 0.044715, %v1136_v11  ;;  %v549_v26 = vmul.f32 %v517_v17, %v293_v56  ;;  %732 = vtanh.f32 %v475_v12  ;;  %v1155_v14 = vadd.f32 %v661_v58, %v884_v50 }
 0x107   :  { %600 = vst.msk [vmem:[%s1258_s3 + $0xd0] sm:$0xff] %vm573_vm2, %v567_v15  ;;  %v1158_v27 = vadd.f32 %v677_v40, %v884_v50  ;;  %v565_v42 = vmul.f32 %v533_v22, %v309_v59  ;;  %v393_v43 = vmul.f32 %v361_v25, %v1121_v6  ;;  %v1163_v28 = vadd.f32 %v884_v50, %v209_v20 }
 0x108   :  { %v377_v18 = vmul.f32 %v345_v2, %v1136_v11  ;;  %582 = vst.msk [vmem:[%s1258_s3 + $0x40] sm:$0xff] %vm573_vm2, %v549_v26  ;;  %v332_v29 = vmul.f32 0.044715, %v1155_v14  ;;  %v1181_v5 = vadd.f32 %v884_v50, %v273_v30  ;;  %v296_v34 = vmul.f32 0.5, %v1059_v54 }
 0x109   :  { %v348_v48 = vmul.f32 0.044715, %v1158_v27  ;;  %598 = vst.msk [vmem:[%s1258_s3 + $0xc0] sm:$0xff] %vm573_vm2, %v565_v42  ;;  %v425_v16 = vadd.f32 %v393_v43, %v1121_v6  ;;  %v330_v32 = vmul.f32 0.044715, %v1163_v28  ;;  %v312_v39 = vmul.f32 0.5, %v1067_v4 }
 0x10a   :  { %v409_v31 = vmul.f32 %v377_v18, %v1136_v11  ;;  %v364_v33 = vmul.f32 %v332_v29, %v1155_v14  ;;  %v346_v45 = vmul.f32 0.044715, %v1181_v5  ;;  %v294_v21 = vmul.f32 0.5, %v1083_v0 }
 0x10b   :  { %v380_v61 = vmul.f32 %v348_v48, %v1158_v27  ;;  %v457_v35 = vmul.f32 0.7978846, %v425_v16  ;;  %v362_v37 = vmul.f32 %v330_v32, %v1163_v28  ;;  %v310_v8 = vmul.f32 0.5, %v1086_v19 }
 0x10c   :  { %v441_v36 = vadd.f32 %v409_v31, %v1136_v11  ;;  %v396_v41 = vmul.f32 %v364_v33, %v1155_v14  ;;  %v378_v56 = vmul.f32 %v346_v45, %v1181_v5  ;;  %v299_v12 = vmul.f32 0.5, %v1094_v23 }
 0x10d   :  { %v723_v38 = vpop.eup %722  ;;  %v412_v44 = vmul.f32 %v380_v61, %v1158_v27  ;;  %734 = vtanh.f32 %v457_v35  ;;  %v394_v54 = vmul.f32 %v362_v37, %v1163_v28  ;;  %v315_v0 = vmul.f32 0.5, %v1097_v24 }
 0x10e   :  { %v725_v46 = vpop.eup %724  ;;  %v520_v49 = vadd.f32 1.0, %v723_v38  ;;  %v473_v50 = vmul.f32 0.7978846, %v441_v36  ;;  %v428_v51 = vadd.f32 %v396_v41, %v1155_v14  ;;  %v410_v55 = vmul.f32 %v378_v56, %v1181_v5 }
 0x10f   :  { %v536_v47 = vadd.f32 1.0, %v725_v46  ;;  %v444_v52 = vadd.f32 %v412_v44, %v1158_v27  ;;  %v426_v53 = vadd.f32 %v394_v54, %v1163_v28  ;;  %v297_v22 = vmul.f32 0.5, %v1121_v6 }
 0x110   :  { %v552_v4 = vmul.f32 %v520_v49, %v296_v34  ;;  %736 = vtanh.f32 %v473_v50  ;;  %v727_v57 = vpop.eup %726  ;;  %v460_v62 = vmul.f32 0.7978846, %v428_v51  ;;  %v442_v13 = vadd.f32 %v410_v55, %v1181_v5 }
 0x111   :  { %v568_v58 = vmul.f32 %v536_v47, %v312_v39  ;;  %v476_v63 = vmul.f32 0.7978846, %v444_v52  ;;  %v729_v3 = vpop.eup %728  ;;  %v518_v7 = vadd.f32 1.0, %v727_v57  ;;  %v458_v9 = vmul.f32 0.7978846, %v426_v53 }
 0x112   :  { %585 = vst.msk [vmem:[%s1258_s3 + $0x58] sm:$0xff] %vm573_vm2, %v552_v4  ;;  %v731_v60 = vpop.eup %730  ;;  %v534_v10 = vadd.f32 1.0, %v729_v3  ;;  %738 = vtanh.f32 %v460_v62  ;;  %v474_v59 = vmul.f32 0.7978846, %v442_v13  ;;  %v313_v42 = vmul.f32 0.5, %v1136_v11 }
 0x113   :  { %601 = vst.msk [vmem:[%s1258_s3 + $0xd8] sm:$0xff] %vm573_vm2, %v568_v58  ;;  %v733_v40 = vpop.eup %732  ;;  %v550_v1 = vmul.f32 %v518_v7, %v294_v21  ;;  %v523_v15 = vadd.f32 1.0, %v731_v60  ;;  %740 = vtanh.f32 %v476_v63  ;;  %v300_v48 = vmul.f32 0.5, %v1155_v14 }
 0x114   :  { %v566_v19 = vmul.f32 %v534_v10, %v310_v8  ;;  %v539_v17 = vadd.f32 1.0, %v733_v40  ;;  %742 = vtanh.f32 %v458_v9  ;;  %v316_v6 = vmul.f32 0.5, %v1158_v27 }
 0x115   :  { %583 = vst.msk [vmem:[%s1258_s3 + $0x48] sm:$0xff] %vm573_vm2, %v550_v1  ;;  %v555_v20 = vmul.f32 %v523_v15, %v299_v12  ;;  %744 = vtanh.f32 %v474_v59  ;;  %v298_v33 = vmul.f32 0.5, %v1163_v28  ;;  %v314_v36 = vmul.f32 0.5, %v1181_v5 }
 0x116   :  { %599 = vst.msk [vmem:[%s1258_s3 + $0xc8] sm:$0xff] %vm573_vm2, %v566_v19  ;;  %v571_v23 = vmul.f32 %v539_v17, %v315_v0 }
 0x117   :  { %588 = vst.msk [vmem:[%s1258_s3 + $0x70] sm:$0xff] %vm573_vm2, %v555_v20 }
 0x118   :  { %604 = vst.msk [vmem:[%s1258_s3 + $0xf0] sm:$0xff] %vm573_vm2, %v571_v23 }
 0x11a   :  { %v735_v24 = vpop.eup %734 }
 0x11b   :  { %v521_v25 = vadd.f32 1.0, %v735_v24 }
 0x11d   :  { %v737_v2 = vpop.eup %736  ;;  %v553_v26 = vmul.f32 %v521_v25, %v297_v22 }
 0x11e   :  { %v537_v43 = vadd.f32 1.0, %v737_v2 }
 0x11f   :  { %v739_v18 = vpop.eup %738  ;;  %586 = vst.msk [vmem:[%s1258_s3 + $0x60] sm:$0xff] %vm573_vm2, %v553_v26 }
 0x120   :  { %v569_v30 = vmul.f32 %v537_v43, %v313_v42  ;;  %v741_v29 = vpop.eup %740  ;;  %v524_v16 = vadd.f32 1.0, %v739_v18 }
 0x121   :  { %v743_v31 = vpop.eup %742  ;;  %v540_v11 = vadd.f32 1.0, %v741_v29 }
 0x122   :  { %602 = vst.msk [vmem:[%s1258_s3 + $0xe0] sm:$0xff] %vm573_vm2, %v569_v30  ;;  %v556_v32 = vmul.f32 %v524_v16, %v300_v48  ;;  %v522_v61 = vadd.f32 1.0, %v743_v31  ;;  %v745_v34 = vpop.eup %744 }
 0x123   :  { %v572_v35 = vmul.f32 %v540_v11, %v316_v6  ;;  %v538_v37 = vadd.f32 1.0, %v745_v34 }
 0x124   :  { %589 = vst.msk [vmem:[%s1258_s3 + $0x78] sm:$0xff] %vm573_vm2, %v556_v32  ;;  %v554_v14 = vmul.f32 %v522_v61, %v298_v33 }
 0x125   :  { %605 = vst.msk [vmem:[%s1258_s3 + $0xf8] sm:$0xff] %vm573_vm2, %v572_v35  ;;  %v570_v27 = vmul.f32 %v538_v37, %v314_v36 }
 0x126   :  { %587 = vst.msk [vmem:[%s1258_s3 + $0x68] sm:$0xff] %vm573_vm2, %v554_v14 }
 0x127   :  { %603 = vst.msk [vmem:[%s1258_s3 + $0xe8] sm:$0xff] %vm573_vm2, %v570_v27 }

</bundles_post_ra>
